<compile_context>
chip_gen: v7x
topology: tpu7x:2x2x1
jax: 0.10.0
libtpu: 0.0.40
codegen_flags: <defaults>
</compile_context>

<pallas_src>
import jax
import jax.numpy as jnp
from jax.experimental import pallas as pl
from jax.experimental.pallas import tpu as pltpu


# ------------------------------ fused kernel ------------------------------- #

def _make_fused_kernel(main_flags, branch_flags):
    """Build the fused kernel. `*_flags[i]` says whether FcnBlock i of that FCN
    gets the FCN-level residual add (static at trace time)."""
    main_flags = tuple(main_flags)
    branch_flags = tuple(branch_flags)

    def _run_fcn(h, w, idx, flags):
        # Sequence of FcnBlocks (BN already folded into W/b) followed by proj.
        for apply_res in flags:
            w1, b1, w2, b2 = w[idx], w[idx + 1], w[idx + 2], w[idx + 3]
            idx += 4
            # fc1 (+ folded bn1)
            y1 = jnp.dot(h, w1[...], preferred_element_type=jnp.float32) + b1[...]
            # relu (dropout1 == identity at inference)
            r = jnp.maximum(y1, 0.0)
            # fc2 (+ folded bn2); dropout2 == identity
            y2 = jnp.dot(r, w2[...], preferred_element_type=jnp.float32) + b2[...]
            out = y2 + y1                      # FcnBlock inner residual (post-bn1)
            if apply_res:                      # FCN-level skip (static branch)
                out = out + h
            h = out
        wp, bp = w[idx], w[idx + 1]
        idx += 2
        h = jnp.dot(h, wp[...], preferred_element_type=jnp.float32) + bp[...]
        return h, idx

    def kernel(*refs):
        x_ref, o_ref = refs[0], refs[-1]
        w = refs[1:-1]
        h = x_ref[...]
        # Main FCN + proj_out -> (B, cand * in_dim).
        h, idx = _run_fcn(h, w, 0, main_flags)
        # Candidate branches: merged as block-diagonal weights, so the
        # 'b (d e) -> b d e' split + per-branch FCNs are one matmul stack.
        h, idx = _run_fcn(h, w, idx, branch_flags)
        o_ref[...] = h                          # single lane-dense output slab

    return kernel


def make_forward(main_flags, branch_flags, out_cols, candidate_num):
    kernel = _make_fused_kernel(main_flags, branch_flags)

    @jax.jit
    def forward(x, arrays):
        B = x.shape[0]
        vmem = pl.BlockSpec(memory_space=pltpu.MemorySpace.VMEM)
        y = pl.pallas_call(
            kernel,
            out_shape=jax.ShapeDtypeStruct((B, out_cols), jnp.float32),
            in_specs=[vmem] * (1 + len(arrays)),
            out_specs=vmem,
        )(x, *arrays)
        # 'b (d n c) -> b d n c' with c = 3
        return y.reshape(B, candidate_num, -1, 3)

    return forward


# -------------------------- parameter construction ------------------------- #

def init_linear(key, in_dim, out_dim):
    k1, k2 = jax.random.split(key)
    bound = 1.0 / float(in_dim) ** 0.5
    w = jax.random.uniform(k1, (in_dim, out_dim), jnp.float32, -bound, bound)
    b = jax.random.uniform(k2, (1, out_dim), jnp.float32, -bound, bound)
    return w, b


def init_bn(key, dim, eps=1e-5):
    # eval-mode BatchNorm1d -> per-feature scale/shift: y = y * s + t
    k1, k2, k3 = jax.random.split(key, 3)
    gamma = 1.0 + 0.1 * jax.random.normal(k1, (1, dim), jnp.float32)
    beta = 0.1 * jax.random.normal(k2, (1, dim), jnp.float32)
    mean = 0.1 * jax.random.normal(k3, (1, dim), jnp.float32)
    var = jnp.ones((1, dim), jnp.float32)
    s = gamma / jnp.sqrt(var + eps)
    t = beta - mean * s
    return s, t


def init_fcn_raw(key, in_dim, out_dim, dim_list):
    dims = [in_dim] + list(dim_list)
    n_blocks = len(dims) - 1
    keys = jax.random.split(key, 4 * n_blocks + 1)
    blocks = []
    for i in range(n_blocks):
        k = keys[4 * i:4 * i + 4]
        w1, b1 = init_linear(k[0], dims[i], dims[i + 1])
        s1, t1 = init_bn(k[1], dims[i + 1])
        w2, b2 = init_linear(k[2], dims[i + 1], dims[i + 1])
        s2, t2 = init_bn(k[3], dims[i + 1])
        blocks.append(dict(w1=w1, b1=b1, s1=s1, t1=t1,
                           w2=w2, b2=b2, s2=s2, t2=t2,
                           residual=(dims[i + 1] == dims[0])))  # dim == start_dim
    proj_w, proj_b = init_linear(keys[-1], dims[-1], out_dim)
    return dict(blocks=blocks, proj_w=proj_w, proj_b=proj_b, dims=dims)


def _fold_block(blk):
    # (x@W + b)*s + t  ==  x@(W*s) + (b*s + t)   (exact eval-mode BN fold)
    w1 = blk["w1"] * blk["s1"]
    b1 = blk["b1"] * blk["s1"] + blk["t1"]
    w2 = blk["w2"] * blk["s2"]
    b2 = blk["b2"] * blk["s2"] + blk["t2"]
    return w1, b1, w2, b2


def _block_diag(mats):
    rows = sum(m.shape[0] for m in mats)
    cols = sum(m.shape[1] for m in mats)
    out = jnp.zeros((rows, cols), jnp.float32)
    r = c = 0
    for m in mats:
        out = out.at[r:r + m.shape[0], c:c + m.shape[1]].set(m)
        r += m.shape[0]
        c += m.shape[1]
    return out


def build_fused_params(raw):
    """Fold BN, merge candidate branches block-diagonally, flatten arrays in
    the exact order the fused kernel consumes them."""
    main = raw["fcn"]
    branches = raw["fcn_out"]

    arrays = []
    main_flags = []
    for blk in main["blocks"]:
        w1, b1, w2, b2 = _fold_block(blk)
        arrays += [w1, b1, w2, b2]
        main_flags.append(blk["residual"])
    arrays += [main["proj_w"], main["proj_b"]]

    branch_flags = []
    n_blocks = len(branches[0]["blocks"])
    for j in range(n_blocks):
        blks = [br["blocks"][j] for br in branches]
        assert all(b["residual"] == blks[0]["residual"] for b in blks)
        folded = [_fold_block(b) for b in blks]
        arrays += [
            _block_diag([f[0] for f in folded]),
            jnp.concatenate([f[1] for f in folded], axis=1),
            _block_diag([f[2] for f in folded]),
            jnp.concatenate([f[3] for f in folded], axis=1),
        ]
        branch_flags.append(blks[0]["residual"])
    arrays += [
        _block_diag([br["proj_w"] for br in branches]),
        jnp.concatenate([br["proj_b"] for br in branches], axis=1),
    ]
    out_cols = arrays[-1].shape[1]   # cand * out_dim
    return tuple(arrays), tuple(main_flags), tuple(branch_flags), out_cols


# --------------------------- pure-JAX reference ----------------------------- #

def _ref_fcn(fcn, x):
    hp = jax.lax.Precision.HIGHEST
    h = x
    for blk in fcn["blocks"]:
        y1 = (jnp.dot(h, blk["w1"], precision=hp) + blk["b1"]) * blk["s1"] + blk["t1"]
        r = jnp.maximum(y1, 0.0)
        y2 = (jnp.dot(r, blk["w2"], precision=hp) + blk["b2"]) * blk["s2"] + blk["t2"]
        h = y2 + y1 + (h if blk["residual"] else 0.0)
    return jnp.dot(h, fcn["proj_w"], precision=hp) + fcn["proj_b"]


def reference_forward(raw, x):
    cand, in_dim = raw["candidate_num"], raw["in_dim"]
    h = _ref_fcn(raw["fcn"], x)
    h = h.reshape(x.shape[0], cand, in_dim)
    outs = [_ref_fcn(raw["fcn_out"][i], h[:, i])[:, None] for i in range(cand)]
    y = jnp.concatenate(outs, axis=1)
    return y.reshape(x.shape[0], cand, -1, 3)


# ---------------------------------- main ----------------------------------- #

if __name__ == "__main__":
    # cfg: in_dim=32, out_dim=12, candidate_num=4, fcn_dims=[32, 64], bran_dims=[32]
    B, in_dim, out_dim, cand = 8, 32, 12, 4
    fcn_dims = [32, 64]
    bran_dims = [32]

    key = jax.random.PRNGKey(0)
    k_x, k_main, *k_br = jax.random.split(key, 2 + cand)
    raw = dict(
        candidate_num=cand,
        in_dim=in_dim,
        fcn=init_fcn_raw(k_main, in_dim, in_dim * cand, fcn_dims),
        fcn_out=[init_fcn_raw(k, in_dim, out_dim, bran_dims) for k in k_br],
    )

    arrays, main_flags, branch_flags, out_cols = build_fused_params(raw)
    forward = make_forward(main_flags, branch_flags, out_cols, cand)

    x = jax.random.normal(k_x, (B, in_dim), jnp.float32)
    y = forward(x, arrays)
    jax.block_until_ready(y)

    assert y.shape == (B, cand, out_dim // 3, 3), y.shape
    assert y.dtype == jnp.float32

    # Numerics check against unfolded eval-mode-BN reference (per review note
    # on the BN-fold). Loose tolerance only to absorb matmul-precision-mode
    # differences; structural bugs would produce O(1) errors.
    y_ref = reference_forward(raw, x)
    max_err = float(jnp.max(jnp.abs(y - y_ref)))
    assert max_err < 1e-1, f"max abs error vs reference: {max_err}"

    print("KERNEL_OK")
</pallas_src>

<mosaic_0001>
module attributes {stable_mosaic.version = 11 : i64} {
  func.func @kernel(%arg0: memref<8x32xf32, #tpu.memory_space<vmem>>, %arg1: memref<32x32xf32, #tpu.memory_space<vmem>>, %arg2: memref<1x32xf32, #tpu.memory_space<vmem>>, %arg3: memref<32x32xf32, #tpu.memory_space<vmem>>, %arg4: memref<1x32xf32, #tpu.memory_space<vmem>>, %arg5: memref<32x64xf32, #tpu.memory_space<vmem>>, %arg6: memref<1x64xf32, #tpu.memory_space<vmem>>, %arg7: memref<64x64xf32, #tpu.memory_space<vmem>>, %arg8: memref<1x64xf32, #tpu.memory_space<vmem>>, %arg9: memref<64x128xf32, #tpu.memory_space<vmem>>, %arg10: memref<1x128xf32, #tpu.memory_space<vmem>>, %arg11: memref<128x128xf32, #tpu.memory_space<vmem>>, %arg12: memref<1x128xf32, #tpu.memory_space<vmem>>, %arg13: memref<128x128xf32, #tpu.memory_space<vmem>>, %arg14: memref<1x128xf32, #tpu.memory_space<vmem>>, %arg15: memref<128x48xf32, #tpu.memory_space<vmem>>, %arg16: memref<1x48xf32, #tpu.memory_space<vmem>>, %arg17: memref<8x48xf32, #tpu.memory_space<vmem>>) attributes {dimension_semantics = [], scalar_prefetch = 0 : i64, scratch_operands = 0 : i64, tpu.core_type = #tpu.core_type<tc>} {
    %c0 = arith.constant 0 : index
    %c0_0 = arith.constant 0 : index
    %0 = vector.load %arg0[%c0, %c0_0] : memref<8x32xf32, #tpu.memory_space<vmem>>, vector<8x32xf32>
    %c0_1 = arith.constant 0 : index
    %c0_2 = arith.constant 0 : index
    %1 = vector.load %arg1[%c0_1, %c0_2] : memref<32x32xf32, #tpu.memory_space<vmem>>, vector<32x32xf32>
    %cst = arith.constant dense<0.000000e+00> : vector<8x32xf32>
    %2 = tpu.matmul %0, %1, %cst {dimension_numbers = #tpu.dot_dimension_numbers<[1], [0], [0], [1], [0, 0, 1, 1], [], []>} : vector<8x32xf32>, vector<32x32xf32>, vector<8x32xf32> -> vector<8x32xf32>
    %c0_3 = arith.constant 0 : index
    %c0_4 = arith.constant 0 : index
    %3 = vector.load %arg2[%c0_3, %c0_4] : memref<1x32xf32, #tpu.memory_space<vmem>>, vector<1x32xf32>
    %4 = vector.broadcast %3 : vector<1x32xf32> to vector<8x32xf32>
    %5 = arith.addf %2, %4 : vector<8x32xf32>
    %cst_5 = arith.constant 0.000000e+00 : f32
    %6 = vector.broadcast %cst_5 : f32 to vector<8x32xf32>
    %7 = arith.maximumf %5, %6 : vector<8x32xf32>
    %c0_6 = arith.constant 0 : index
    %c0_7 = arith.constant 0 : index
    %8 = vector.load %arg3[%c0_6, %c0_7] : memref<32x32xf32, #tpu.memory_space<vmem>>, vector<32x32xf32>
    %cst_8 = arith.constant dense<0.000000e+00> : vector<8x32xf32>
    %9 = tpu.matmul %7, %8, %cst_8 {dimension_numbers = #tpu.dot_dimension_numbers<[1], [0], [0], [1], [0, 0, 1, 1], [], []>} : vector<8x32xf32>, vector<32x32xf32>, vector<8x32xf32> -> vector<8x32xf32>
    %c0_9 = arith.constant 0 : index
    %c0_10 = arith.constant 0 : index
    %10 = vector.load %arg4[%c0_9, %c0_10] : memref<1x32xf32, #tpu.memory_space<vmem>>, vector<1x32xf32>
    %11 = vector.broadcast %10 : vector<1x32xf32> to vector<8x32xf32>
    %12 = arith.addf %9, %11 : vector<8x32xf32>
    %13 = arith.addf %12, %5 : vector<8x32xf32>
    %14 = arith.addf %13, %0 : vector<8x32xf32>
    %c0_11 = arith.constant 0 : index
    %c0_12 = arith.constant 0 : index
    %15 = vector.load %arg5[%c0_11, %c0_12] : memref<32x64xf32, #tpu.memory_space<vmem>>, vector<32x64xf32>
    %cst_13 = arith.constant dense<0.000000e+00> : vector<8x64xf32>
    %16 = tpu.matmul %14, %15, %cst_13 {dimension_numbers = #tpu.dot_dimension_numbers<[1], [0], [0], [1], [0, 0, 1, 1], [], []>} : vector<8x32xf32>, vector<32x64xf32>, vector<8x64xf32> -> vector<8x64xf32>
    %c0_14 = arith.constant 0 : index
    %c0_15 = arith.constant 0 : index
    %17 = vector.load %arg6[%c0_14, %c0_15] : memref<1x64xf32, #tpu.memory_space<vmem>>, vector<1x64xf32>
    %18 = vector.broadcast %17 : vector<1x64xf32> to vector<8x64xf32>
    %19 = arith.addf %16, %18 : vector<8x64xf32>
    %cst_16 = arith.constant 0.000000e+00 : f32
    %20 = vector.broadcast %cst_16 : f32 to vector<8x64xf32>
    %21 = arith.maximumf %19, %20 : vector<8x64xf32>
    %c0_17 = arith.constant 0 : index
    %c0_18 = arith.constant 0 : index
    %22 = vector.load %arg7[%c0_17, %c0_18] : memref<64x64xf32, #tpu.memory_space<vmem>>, vector<64x64xf32>
    %cst_19 = arith.constant dense<0.000000e+00> : vector<8x64xf32>
    %23 = tpu.matmul %21, %22, %cst_19 {dimension_numbers = #tpu.dot_dimension_numbers<[1], [0], [0], [1], [0, 0, 1, 1], [], []>} : vector<8x64xf32>, vector<64x64xf32>, vector<8x64xf32> -> vector<8x64xf32>
    %c0_20 = arith.constant 0 : index
    %c0_21 = arith.constant 0 : index
    %24 = vector.load %arg8[%c0_20, %c0_21] : memref<1x64xf32, #tpu.memory_space<vmem>>, vector<1x64xf32>
    %25 = vector.broadcast %24 : vector<1x64xf32> to vector<8x64xf32>
    %26 = arith.addf %23, %25 : vector<8x64xf32>
    %27 = arith.addf %26, %19 : vector<8x64xf32>
    %c0_22 = arith.constant 0 : index
    %c0_23 = arith.constant 0 : index
    %28 = vector.load %arg9[%c0_22, %c0_23] : memref<64x128xf32, #tpu.memory_space<vmem>>, vector<64x128xf32>
    %cst_24 = arith.constant dense<0.000000e+00> : vector<8x128xf32>
    %29 = tpu.matmul %27, %28, %cst_24 {dimension_numbers = #tpu.dot_dimension_numbers<[1], [0], [0], [1], [0, 0, 1, 1], [], []>} : vector<8x64xf32>, vector<64x128xf32>, vector<8x128xf32> -> vector<8x128xf32>
    %c0_25 = arith.constant 0 : index
    %c0_26 = arith.constant 0 : index
    %30 = vector.load %arg10[%c0_25, %c0_26] : memref<1x128xf32, #tpu.memory_space<vmem>>, vector<1x128xf32>
    %31 = vector.broadcast %30 : vector<1x128xf32> to vector<8x128xf32>
    %32 = arith.addf %29, %31 : vector<8x128xf32>
    %c0_27 = arith.constant 0 : index
    %c0_28 = arith.constant 0 : index
    %33 = vector.load %arg11[%c0_27, %c0_28] : memref<128x128xf32, #tpu.memory_space<vmem>>, vector<128x128xf32>
    %cst_29 = arith.constant dense<0.000000e+00> : vector<8x128xf32>
    %34 = tpu.matmul %32, %33, %cst_29 {dimension_numbers = #tpu.dot_dimension_numbers<[1], [0], [0], [1], [0, 0, 1, 1], [], []>} : vector<8x128xf32>, vector<128x128xf32>, vector<8x128xf32> -> vector<8x128xf32>
    %c0_30 = arith.constant 0 : index
    %c0_31 = arith.constant 0 : index
    %35 = vector.load %arg12[%c0_30, %c0_31] : memref<1x128xf32, #tpu.memory_space<vmem>>, vector<1x128xf32>
    %36 = vector.broadcast %35 : vector<1x128xf32> to vector<8x128xf32>
    %37 = arith.addf %34, %36 : vector<8x128xf32>
    %cst_32 = arith.constant 0.000000e+00 : f32
    %38 = vector.broadcast %cst_32 : f32 to vector<8x128xf32>
    %39 = arith.maximumf %37, %38 : vector<8x128xf32>
    %c0_33 = arith.constant 0 : index
    %c0_34 = arith.constant 0 : index
    %40 = vector.load %arg13[%c0_33, %c0_34] : memref<128x128xf32, #tpu.memory_space<vmem>>, vector<128x128xf32>
    %cst_35 = arith.constant dense<0.000000e+00> : vector<8x128xf32>
    %41 = tpu.matmul %39, %40, %cst_35 {dimension_numbers = #tpu.dot_dimension_numbers<[1], [0], [0], [1], [0, 0, 1, 1], [], []>} : vector<8x128xf32>, vector<128x128xf32>, vector<8x128xf32> -> vector<8x128xf32>
    %c0_36 = arith.constant 0 : index
    %c0_37 = arith.constant 0 : index
    %42 = vector.load %arg14[%c0_36, %c0_37] : memref<1x128xf32, #tpu.memory_space<vmem>>, vector<1x128xf32>
    %43 = vector.broadcast %42 : vector<1x128xf32> to vector<8x128xf32>
    %44 = arith.addf %41, %43 : vector<8x128xf32>
    %45 = arith.addf %44, %37 : vector<8x128xf32>
    %46 = arith.addf %45, %32 : vector<8x128xf32>
    %c0_38 = arith.constant 0 : index
    %c0_39 = arith.constant 0 : index
    %47 = vector.load %arg15[%c0_38, %c0_39] : memref<128x48xf32, #tpu.memory_space<vmem>>, vector<128x48xf32>
    %cst_40 = arith.constant dense<0.000000e+00> : vector<8x48xf32>
    %48 = tpu.matmul %46, %47, %cst_40 {dimension_numbers = #tpu.dot_dimension_numbers<[1], [0], [0], [1], [0, 0, 1, 1], [], []>} : vector<8x128xf32>, vector<128x48xf32>, vector<8x48xf32> -> vector<8x48xf32>
    %c0_41 = arith.constant 0 : index
    %c0_42 = arith.constant 0 : index
    %49 = vector.load %arg16[%c0_41, %c0_42] : memref<1x48xf32, #tpu.memory_space<vmem>>, vector<1x48xf32>
    %50 = vector.broadcast %49 : vector<1x48xf32> to vector<8x48xf32>
    %51 = arith.addf %48, %50 : vector<8x48xf32>
    %c0_43 = arith.constant 0 : index
    %c0_44 = arith.constant 0 : index
    %52 = vector.load %arg17[%c0_43, %c0_44] : memref<8x48xf32, #tpu.memory_space<vmem>>, vector<8x48xf32>
    tpu.vector_store %arg17[%c0_43, %c0_44], %51 {strides = array<i32>} : memref<8x48xf32, #tpu.memory_space<vmem>>, vector<8x48xf32>,
    return
  }
}

</mosaic_0001>

<bundles_post_ra>
// kernel: forward.1
= control target key start
LH: loop header
LB: loop body
LE: loop exit
PB: predicated region body
PF: predicated region fallthrough
CT: control target
= control target key end

     0   :  { %s1762_s0 = inlined_call_operand.vmem [shape: f32[8,32], index: 0, kind: input, shape index: {}]   ;;  %s1763_s1 = inlined_call_operand.hbm [shape: f32[32,32], index: 1, kind: input, shape index: {}]   ;;  %s1764_s2 = inlined_call_operand.vmem [shape: f32[1,32], index: 2, kind: input, shape index: {}]   ;;  %s1765_s3 = inlined_call_operand.hbm [shape: f32[32,32], index: 3, kind: input, shape index: {}]   ;;  %s1766_s4 = inlined_call_operand.vmem [shape: f32[1,32], index: 4, kind: input, shape index: {}]   ;;  %s1767_s5 = inlined_call_operand.hbm [shape: f32[32,64], index: 5, kind: input, shape index: {}]   ;;  %s1768_s6 = inlined_call_operand.vmem [shape: f32[1,64], index: 6, kind: input, shape index: {}]   ;;  %s1769_s7 = inlined_call_operand.vmem [shape: f32[64,64], index: 7, kind: input, shape index: {}]   ;;  %s1770_s8 = inlined_call_operand.vmem [shape: f32[1,64], index: 8, kind: input, shape index: {}]   ;;  %s1771_s9 = inlined_call_operand.hbm [shape: f32[64,128], index: 9, kind: input, shape index: {}]   ;;  %s1772_s10 = inlined_call_operand.vmem [shape: f32[1,128], index: 10, kind: input, shape index: {}]   ;;  %s1773_s11 = inlined_call_operand.vmem [shape: f32[128,128], index: 11, kind: input, shape index: {}]   ;;  %s1774_s12 = inlined_call_operand.vmem [shape: f32[1,128], index: 12, kind: input, shape index: {}]   ;;  %s1775_s13 = inlined_call_operand.hbm [shape: f32[128,128], index: 13, kind: input, shape index: {}]   ;;  %s1776_s14 = inlined_call_operand.vmem [shape: f32[1,128], index: 14, kind: input, shape index: {}]   ;;  %s1777_s15 = inlined_call_operand.vmem [shape: f32[128,48], index: 15, kind: input, shape index: {}]   ;;  %s1778_s16 = inlined_call_operand.vmem [shape: f32[1,48], index: 16, kind: input, shape index: {}]   ;;  %s1779_s17 = inlined_call_operand.vmem [shape: f32[8,48], index: 17, kind: output, shape index: {}]  }
   0x1   :  { %1781 = sst [smem:[#allocation13_spill]] %s1762_s0 }
   0x2   :  { %1782 = sst [smem:[#allocation14_spill]] %s1763_s1 }
   0x3   :  { %1783 = sst [smem:[#allocation15_spill]] %s1779_s17 }
   0x4   :  { %22 = vsyncpa [#allocation3], 0 }
   0x5   :  { %23 = vsyncpa [#allocation5], 0 }
   0x6   :  { %24 = vsyncpa [#allocation8], 0  ;;  %s1364_s24 = smov [#allocation4]   ;;  %s1365_s26 = smov [#allocation7]  }
   0x7   :  { %s46_s25 = sshll.u32 %s1364_s24, 4  ;;  %s78_s27 = sshll.u32 %s1365_s26, 4  ;;  %s47_s25 = int_to_ptr.vmem [resolvable:$true] %s46_s25  ;;  %s1464_s27 = int_to_ptr.vmem [resolvable:$true] %s78_s27 }
   0x8   :  { %s1248_s0 = scalar_lea.hbm %s1765_s3, 512 }
   0x9   :  { %p1249_p0 = scmp.ne.s32.totalorder %s1765_s3, %s1248_s0  ;;  %p1252_p1 = scmp.lt.u32.totalorder %s1248_s0, %s1765_s3 }
   0xb   :  { %p1254_p2 = pnand %p1252_p1, %p1249_p0 }
   0xd   :  { %1257 = shalt.err (!%p1254_p2)
}
   0xe   :  { %s1258_s20 = scalar_lea.vmem %s47_s25, 512  ;;  %p1263_p4 = scmp.lt.s32.totalorder %s47_s25, %s47_s25 }
   0xf   :  { %p1259_p3 = scmp.ne.s32.totalorder %s47_s25, %s1258_s20  ;;  %p1264_p5 = scmp.lt.s32.totalorder %s1258_s20, %s1258_s20 }
  0x11   :  { %p1265_p6 = por %p1264_p5, %p1263_p4 }
  0x13   :  { %p1266_p7 = pnand %p1265_p6, %p1259_p3 }
  0x15   :  { %1269 = shalt.err (!%p1266_p7)
}
  0x16   :  { %s1366_s21 = smov 128   ;;  %s1367_s22 = smov 8  }
  0x17   :  { %52 = dma.hbm_to_vmem [thread:$0]  %s1765_s3, 512, %s47_s25, [#allocation5], %s1366_s21, %s1366_s21, %s1367_s22  }
  0x18   :  { %s1270_s29 = scalar_lea.hbm %s1771_s9, 1024 }
  0x19   :  { %p1271_p8 = scmp.ne.s32.totalorder %s1771_s9, %s1270_s29  ;;  %p1274_p9 = scmp.lt.u32.totalorder %s1270_s29, %s1771_s9 }
  0x1b   :  { %p1276_p10 = pnand %p1274_p9, %p1271_p8 }
  0x1d   :  { %1279 = shalt.err (!%p1276_p10)
}
  0x1e   :  { %s1280_s1 = scalar_lea.vmem %s1464_s27, 1024  ;;  %p1285_p12 = scmp.lt.s32.totalorder %s1464_s27, %s1464_s27 }
  0x1f   :  { %p1281_p11 = scmp.ne.s32.totalorder %s1464_s27, %s1280_s1  ;;  %p1286_p13 = scmp.lt.s32.totalorder %s1280_s1, %s1280_s1 }
  0x21   :  { %p1287_p0 = por %p1286_p13, %p1285_p12 }
  0x23   :  { %p1288_p1 = pnand %p1287_p0, %p1281_p11 }
  0x25   :  { %1291 = shalt.err (!%p1288_p1)
}
  0x26   :  { %84 = dma.hbm_to_vmem [thread:$0]  %s1771_s9, 1024, %s1464_s27, [#allocation8], %s1366_s21, %s1366_s21, %s1367_s22  }
  0x27   :  { %s1368_s20 = smov [#allocation2]   ;;  %s1369_s24 = smov [#allocation6]  }
  0x28   :  { %s32_s23 = sshll.u32 %s1368_s20, 4  ;;  %s60_s26 = sshll.u32 %s1369_s24, 4  ;;  %s33_s23 = int_to_ptr.vmem [resolvable:$true] %s32_s23  ;;  %s1501_s26 = int_to_ptr.vmem [resolvable:$true] %s60_s26 }
  0x29   :  { %s1784_s0 = sld [smem:[#allocation14_spill]] }
  0x2f   :  { %s1292_s30 = scalar_lea.hbm %s1784_s0, 512 }
  0x30   :  { %p1293_p2 = scmp.ne.s32.totalorder %s1784_s0, %s1292_s30  ;;  %p1296_p3 = scmp.lt.u32.totalorder %s1292_s30, %s1784_s0 }
  0x32   :  { %p1298_p4 = pnand %p1296_p3, %p1293_p2 }
  0x34   :  { %1301 = shalt.err (!%p1298_p4)
}
  0x35   :  { %s1302_s9 = scalar_lea.vmem %s33_s23, 512  ;;  %p1307_p6 = scmp.lt.s32.totalorder %s33_s23, %s33_s23 }
  0x36   :  { %p1303_p5 = scmp.ne.s32.totalorder %s33_s23, %s1302_s9  ;;  %p1308_p7 = scmp.lt.s32.totalorder %s1302_s9, %s1302_s9 }
  0x38   :  { %p1309_p8 = por %p1308_p7, %p1307_p6 }
  0x3a   :  { %p1310_p9 = pnand %p1309_p8, %p1303_p5 }
  0x3c   :  { %1313 = shalt.err (!%p1310_p9)
}
  0x3d   :  { %38 = dma.hbm_to_vmem [thread:$0]  %s1784_s0, 512, %s33_s23, [#allocation3], %s1366_s21, %s1366_s21, %s1367_s22  }
  0x3e   :  { %s1314_s17 = scalar_lea.hbm %s1767_s5, 512 }
  0x3f   :  { %p1315_p10 = scmp.ne.s32.totalorder %s1767_s5, %s1314_s17  ;;  %p1318_p11 = scmp.lt.u32.totalorder %s1314_s17, %s1767_s5 }
  0x41   :  { %p1320_p12 = pnand %p1318_p11, %p1315_p10 }
  0x43   :  { %1323 = shalt.err (!%p1320_p12)
}
  0x44   :  { %s1324_s18 = scalar_lea.vmem %s1501_s26, 512  ;;  %p1329_p0 = scmp.lt.s32.totalorder %s1501_s26, %s1501_s26 }
  0x45   :  { %p1325_p13 = scmp.ne.s32.totalorder %s1501_s26, %s1324_s18  ;;  %p1330_p1 = scmp.lt.s32.totalorder %s1324_s18, %s1324_s18 }
  0x47   :  { %p1331_p2 = por %p1330_p1, %p1329_p0 }
  0x49   :  { %p1332_p3 = pnand %p1331_p2, %p1325_p13 }
  0x4b   :  { %1335 = shalt.err (!%p1332_p3)
}
  0x4c   :  { %66 = dma.hbm_to_vmem [thread:$0]  %s1767_s5, 512, %s1501_s26, [#allocation5], %s1366_s21, %s1366_s21, %s1367_s22  }
  0x4d   :  { %s1370_s19 = smov [#allocation9]   ;;  %s1336_s3 = scalar_lea.hbm %s1775_s13, 2048 }
  0x4e   :  { %s96_s1 = sshll.u32 %s1370_s19, 4  ;;  %p1337_p4 = scmp.ne.s32.totalorder %s1775_s13, %s1336_s3  ;;  %s97_s1 = int_to_ptr.vmem [resolvable:$true] %s96_s1 }
  0x4f   :  { %p1340_p5 = scmp.lt.u32.totalorder %s1336_s3, %s1775_s13 }
  0x51   :  { %p1342_p6 = pnand %p1340_p5, %p1337_p4 }
  0x53   :  { %1345 = shalt.err (!%p1342_p6)
}
  0x54   :  { %s1346_s28 = scalar_lea.vmem %s97_s1, 2048  ;;  %p1351_p8 = scmp.lt.s32.totalorder %s97_s1, %s97_s1 }
  0x55   :  { %p1347_p7 = scmp.ne.s32.totalorder %s97_s1, %s1346_s28  ;;  %p1352_p9 = scmp.lt.s32.totalorder %s1346_s28, %s1346_s28 }
  0x57   :  { %p1353_p10 = por %p1352_p9, %p1351_p8 }
  0x59   :  { %p1354_p11 = pnand %p1353_p10, %p1347_p7 }
  0x5b   :  { %1357 = shalt.err (!%p1354_p11)
}
  0x5c   :  { %102 = dma.hbm_to_vmem [thread:$0]  %s1775_s13, 2048, %s97_s1, [#allocation8], %s1366_s21, %s1366_s21, %s1367_s22  }
  0x5d   :  { %1358 = dma.done.wait [#allocation3], 512  }
  0x5e   :  { %1359 = vsyncadd [#allocation3], 4294966784 }
  0x5f   :  { %1360 = dma.done.wait [#allocation5], 1024  }
  0x60   :  { %1361 = vsyncadd [#allocation5], 4294966272 }
  0x61   :  { %1362 = dma.done.wait [#allocation8], 3072  }
  0x62   :  { %1363 = vsyncadd [#allocation8], 4294964224  ;;  %v1371_v0 = vmov 0.0|0.0   ;;  %vm1372_vm0 = vmmov 0   ;;  %v1373_v1 = vmov 0.0   ;;  %v125_v2 = vld [vmem:[#allocation2] sm:$0xff] }
  0x63   :  { %1124 = vmatprep.subr.bf16.mxu0 %v1371_v0  ;;  %956 = vmatprep.mubr.msk.f32.mxu0 %vm1372_vm0, %v1373_v1  ;;  %v126_v3 = vld [vmem:[#allocation2 + $0x8] sm:$0xff]  ;;  %v127_v4 = vld [vmem:[#allocation2 + $0x10] sm:$0xff]  ;;  %v128_v6 = vld [vmem:[#allocation2 + $0x18] sm:$0xff]  ;;  %s1785_s22 = sld [smem:[#allocation13_spill]]  ;;  %vm136_vm1 = vcmask 261120   ;;  %vm397_vm2 = vcmask 523264  }
  0x64   :  { %1142 = vmatprep.subr.bf16.mxu1 %v1371_v0  ;;  %997 = vmatprep.mubr.msk.f32.mxu1 %vm1372_vm0, %v1373_v1  ;;  %v1125_v5 = vpack.c.bf16 %v126_v3, %v125_v2  ;;  %v1128_v7 = vpack.c.bf16 %v128_v6, %v127_v4  ;;  %v211_v8 = vld [vmem:[#allocation4] sm:$0xff]  ;;  %v212_v9 = vld [vmem:[#allocation4 + $0x8] sm:$0xff]  ;;  %v213_v12 = vld [vmem:[#allocation4 + $0x10] sm:$0xff]  ;;  %vm842_vm3 = vcmask 392192   ;;  %s1786_s13 = sld [smem:[#allocation15_spill]] }
  0x65   :  { %v1131_v11 = vpack.c.bf16 %v212_v9, %v211_v8  ;;  %v214_v13 = vld [vmem:[#allocation4 + $0x18] sm:$0xff]  ;;  %v851_v15 = vld [vmem:[%s1764_s2] ss:$0 sm:$0xff]  ;;  %v298_v21 = vld [vmem:[#allocation6 + $0x8] sm:$0xff] }
  0x66   :  { %1126 = vmatpush3.bf16.msra.mxu0 %v1125_v5  ;;  %v1134_v14 = vpack.c.bf16 %v214_v13, %v213_v12  ;;  %v297_v20 = vld [vmem:[#allocation6] sm:$0xff]  ;;  %v299_v23 = vld [vmem:[#allocation6 + $0x10] sm:$0xff]  ;;  %v300_v24 = vld [vmem:[#allocation6 + $0x18] sm:$0xff] }
  0x67   :  { %1127 = vmatprep.subr.bf16.mxu0 %v1371_v0  ;;  %v1137_v22 = vpack.c.bf16 %v298_v21, %v297_v20  ;;  %v1140_v25 = vpack.c.bf16 %v300_v24, %v299_v23  ;;  %v382_v26 = vld [vmem:[%s1769_s7] sm:$0xff]  ;;  %v383_v27 = vld [vmem:[%s1769_s7 + $0x8] sm:$0xff]  ;;  %v384_v28 = vld [vmem:[%s1769_s7 + $0x10] sm:$0xff] }
  0x68   :  { %v1143_v29 = vpack.c.bf16 %v383_v27, %v382_v26  ;;  %v385_v30 = vld [vmem:[%s1769_s7 + $0x18] sm:$0xff]  ;;  %v386_v32 = vld [vmem:[%s1769_s7 + $0x20] sm:$0xff]  ;;  %v387_v33 = vld [vmem:[%s1769_s7 + $0x28] sm:$0xff] }
  0x69   :  { %v124_v10 = vld [vmem:[%s1785_s22] sm:$0xff]  ;;  %v1146_v31 = vpack.c.bf16 %v385_v30, %v384_v28  ;;  %v1149_v34 = vpack.c.bf16 %v387_v33, %v386_v32  ;;  %v388_v41 = vld [vmem:[%s1769_s7 + $0x30] sm:$0xff]  ;;  %v389_v42 = vld [vmem:[%s1769_s7 + $0x38] sm:$0xff] }
  0x6a   :  { %1129 = vmatpush3.bf16.msra.mxu0 %v1128_v7  ;;  %1144 = vmatpush3.bf16.msra.mxu1 %v1143_v29  ;;  %v853_v35 = vld [vmem:[%s1766_s4] ss:$0 sm:$0xff]  ;;  %v1152_v43 = vpack.c.bf16 %v389_v42, %v388_v41  ;;  %v473_v45 = vld [vmem:[#allocation7 + $0x8] sm:$0xff]  ;;  %v474_v46 = vld [vmem:[#allocation7 + $0x10] sm:$0xff] }
  0x6b   :  { %1130 = vmatprep.subr.bf16.mxu0 %v1371_v0  ;;  %1145 = vmatprep.subr.bf16.mxu1 %v1371_v0  ;;  %v472_v44 = vld [vmem:[#allocation7] sm:$0xff]  ;;  %v475_v48 = vld [vmem:[#allocation7 + $0x18] sm:$0xff]  ;;  %v477_v51 = vld [vmem:[#allocation7 + $0x28] sm:$0xff] }
  0x6c   :  { %v1155_v47 = vpack.c.bf16 %v473_v45, %v472_v44  ;;  %v1158_v49 = vpack.c.bf16 %v475_v48, %v474_v46  ;;  %v476_v50 = vld [vmem:[#allocation7 + $0x20] sm:$0xff]  ;;  %v478_v58 = vld [vmem:[#allocation7 + $0x30] sm:$0xff]  ;;  %v479_v59 = vld [vmem:[#allocation7 + $0x38] sm:$0xff] }
  0x6d   :  { %957 = vmatmul.mubr.msk.f32.vlgmr.msra.gmra.mrb[0].mxu0 %vm136_vm1, %v124_v10  ;;  %v1161_v52 = vpack.c.bf16 %v477_v51, %v476_v50  ;;  %v855_v53 = vld [vmem:[%s1768_s6] ss:$0 sm:$0xff]  ;;  %v1164_v60 = vpack.c.bf16 %v479_v59, %v478_v58  ;;  %v561_v62 = vld [vmem:[%s1773_s11 + $0x8] sm:$0xff]  ;;  %v562_v63 = vld [vmem:[%s1773_s11 + $0x10] sm:$0xff] }
  0x6e   :  { %1132 = vmatpush3.bf16.msra.mxu0 %v1131_v11  ;;  %967 = vmatprep.mubr.msk.f32.mxu0 %vm1372_vm0, %v1373_v1  ;;  %v560_v61 = vld [vmem:[%s1773_s11] sm:$0xff]  ;;  %v563_v3 = vld [vmem:[%s1773_s11 + $0x18] sm:$0xff]  ;;  %v565_v6 = vld [vmem:[%s1773_s11 + $0x28] sm:$0xff] }
  0x6f   :  { %1133 = vmatprep.subr.bf16.mxu0 %v1371_v0  ;;  %1147 = vmatpush3.bf16.msra.mxu1 %v1146_v31  ;;  %v1167_v2 = vpack.c.bf16 %v561_v62, %v560_v61  ;;  %v1170_v4 = vpack.c.bf16 %v563_v3, %v562_v63  ;;  %v564_v5 = vld [vmem:[%s1773_s11 + $0x20] sm:$0xff]  ;;  %v566_v8 = vld [vmem:[%s1773_s11 + $0x30] sm:$0xff]  ;;  %v567_v9 = vld [vmem:[%s1773_s11 + $0x38] sm:$0xff] }
  0x70   :  { %1148 = vmatprep.subr.bf16.mxu1 %v1371_v0  ;;  %v1173_v7 = vpack.c.bf16 %v565_v6, %v564_v5  ;;  %v568_v11 = vld [vmem:[%s1773_s11 + $0x40] sm:$0xff]  ;;  %v569_v12 = vld [vmem:[%s1773_s11 + $0x48] sm:$0xff]  ;;  %v575_v26 = vld [vmem:[%s1773_s11 + $0x78] sm:$0xff] }
  0x71   :  { %v1179_v13 = vpack.c.bf16 %v569_v12, %v568_v11  ;;  %v857_v20 = vld [vmem:[%s1770_s8] ss:$0 sm:$0xff]  ;;  %v655_v29 = vld [vmem:[#allocation9 + $0x8] sm:$0xff]  ;;  %v656_v30 = vld [vmem:[#allocation9 + $0x10] sm:$0xff] }
  0x72   :  { %1135 = vmatpush3.bf16.msra.mxu0 %v1134_v14  ;;  %v570_v14 = vld [vmem:[%s1773_s11 + $0x50] sm:$0xff]  ;;  %v654_v28 = vld [vmem:[#allocation9] sm:$0xff]  ;;  %v657_v32 = vld [vmem:[#allocation9 + $0x18] sm:$0xff] }
  0x73   :  { %1136 = vmatprep.subr.bf16.mxu0 %v1371_v0  ;;  %1150 = vmatpush3.bf16.msra.mxu1 %v1149_v34  ;;  %v1191_v31 = vpack.c.bf16 %v655_v29, %v654_v28  ;;  %v1194_v33 = vpack.c.bf16 %v657_v32, %v656_v30  ;;  %v658_v34 = vld [vmem:[#allocation9 + $0x20] sm:$0xff]  ;;  %v663_v41 = vld [vmem:[#allocation9 + $0x48] sm:$0xff]  ;;  %v665_v44 = vld [vmem:[#allocation9 + $0x58] sm:$0xff] }
  0x74   :  { %1151 = vmatprep.subr.bf16.mxu1 %v1371_v0  ;;  %v666_v46 = vld [vmem:[#allocation9 + $0x60] sm:$0xff]  ;;  %v751_v58 = vld [vmem:[%s1777_s15 + $0x10] sm:$0xff]  ;;  %v754_v62 = vld [vmem:[%s1777_s15 + $0x28] sm:$0xff] }
  0x75   :  { %v753_v61 = vld [vmem:[%s1777_s15 + $0x20] sm:$0xff]  ;;  %v756_v3 = vld [vmem:[%s1777_s15 + $0x38] sm:$0xff]  ;;  %v758_v6 = vld [vmem:[%s1777_s15 + $0x48] sm:$0xff] }
  0x76   :  { %v1221_v63 = vpack.c.bf16 %v754_v62, %v753_v61  ;;  %v757_v5 = vld [vmem:[%s1777_s15 + $0x40] sm:$0xff] }
  0x77   :  { %1153 = vmatpush3.bf16.msra.mxu1 %v1152_v43  ;;  %v664_v43 = vld [vmem:[#allocation9 + $0x50] sm:$0xff]  ;;  %v861_v11 = vld [vmem:[%s1774_s12] ss:$0 sm:$0xff] }
  0x78   :  { %1166 = vmatprep.subr.bf16.mxu1 %v1371_v0  ;;  %v1206_v45 = vpack.c.bf16 %v665_v44, %v664_v43 }
 0x140   :  { %v206_v16 = vpop.f32.mrb[0].mxu0 }
 0x141   :  { %v207_v17 = vadd.f32 %v851_v15, %v206_v16  ;;  %v958_v18 = vpop.f32.mrb[1].mxu0  ;;  %v571_v15 = vld [vmem:[%s1773_s11 + $0x58] sm:$0xff] }
 0x142   :  { %v1182_v16 = vpack.c.bf16 %v571_v15, %v570_v14  ;;  %v573_v18 = vld [vmem:[%s1773_s11 + $0x68] sm:$0xff] }
 0x143   :  { %v210_v19 = vmax.f32 %v207_v17, 0.0 }
 0x145   :  { %968 = vmatmul.mubr.msk.f32.vlgmr.msra.gmra.mrb[2].mxu0 %vm136_vm1, %v210_v19 }
 0x146   :  { %978 = vmatprep.mubr.msk.f32.mxu0 %vm1372_vm0, %v1373_v1  ;;  %1138 = vmatpush3.bf16.msra.mxu0 %v1137_v22 }
 0x147   :  { %1139 = vmatprep.subr.bf16.mxu0 %v1371_v0 }
 0x14a   :  { %1141 = vmatpush3.bf16.msra.mxu0 %v1140_v25  ;;  %v574_v25 = vld [vmem:[%s1773_s11 + $0x70] sm:$0xff] }
 0x14b   :  { %1154 = vmatprep.subr.bf16.mxu0 %v1371_v0  ;;  %v1188_v27 = vpack.c.bf16 %v575_v26, %v574_v25 }
 0x218   :  { %v291_v36 = vpop.f32.mrb[2].mxu0 }
 0x219   :  { %v292_v37 = vadd.f32 %v853_v35, %v291_v36  ;;  %v969_v38 = vpop.f32.mrb[3].mxu0  ;;  %v659_v35 = vld [vmem:[#allocation9 + $0x28] sm:$0xff] }
 0x21a   :  { %v1197_v36 = vpack.c.bf16 %v659_v35, %v658_v34  ;;  %v661_v38 = vld [vmem:[#allocation9 + $0x38] sm:$0xff] }
 0x21b   :  { %v295_v39 = vadd.f32 %v292_v37, %v207_v17  ;;  %v572_v17 = vld [vmem:[%s1773_s11 + $0x60] sm:$0xff]  ;;  %v660_v37 = vld [vmem:[#allocation9 + $0x30] sm:$0xff] }
 0x21c   :  { %v1185_v19 = vpack.c.bf16 %v573_v18, %v572_v17  ;;  %v762_v17 = vld [vmem:[%s1777_s15 + $0x68] sm:$0xff] }
 0x21d   :  { %v296_v40 = vadd.f32 %v295_v39, %v124_v10  ;;  %v1176_v10 = vpack.c.bf16 %v567_v9, %v566_v8  ;;  %v1200_v39 = vpack.c.bf16 %v661_v38, %v660_v37  ;;  %v759_v8 = vld [vmem:[%s1777_s15 + $0x50] sm:$0xff]  ;;  %v760_v9 = vld [vmem:[%s1777_s15 + $0x58] sm:$0xff] }
 0x21f   :  { %979 = vmatmul.mubr.msk.f32.vlgmr.msra.gmra.mrb[4].mxu0 %vm136_vm1, %v296_v40  ;;  %v662_v40 = vld [vmem:[#allocation9 + $0x40] sm:$0xff] }
 0x220   :  { %1016 = vmatprep.mubr.msk.f32.mxu0 %vm1372_vm0, %v1373_v1  ;;  %1156 = vmatpush3.bf16.msra.mxu0 %v1155_v47  ;;  %v1203_v42 = vpack.c.bf16 %v663_v41, %v662_v40  ;;  %v667_v47 = vld [vmem:[#allocation9 + $0x68] sm:$0xff] }
 0x221   :  { %1157 = vmatprep.subr.bf16.mxu0 %v1371_v0  ;;  %v1209_v48 = vpack.c.bf16 %v667_v47, %v666_v46 }
 0x224   :  { %1159 = vmatpush3.bf16.msra.mxu0 %v1158_v49  ;;  %v859_v49 = vld [vmem:[%s1772_s10] ss:$0 sm:$0xff] }
 0x225   :  { %1160 = vmatprep.subr.bf16.mxu0 %v1371_v0 }
 0x228   :  { %1162 = vmatpush3.bf16.msra.mxu0 %v1161_v52 }
 0x229   :  { %1163 = vmatprep.subr.bf16.mxu0 %v1371_v0 }
 0x22c   :  { %1165 = vmatpush3.bf16.msra.mxu0 %v1164_v60 }
 0x22d   :  { %1190 = vmatprep.subr.bf16.mxu0 %v1371_v0 }
 0x2f2   :  { %v377_v54 = vpop.f32.mrb[4].mxu0 }
 0x2f3   :  { %v378_v55 = vadd.f32 %v855_v53, %v377_v54  ;;  %v980_v56 = vpop.f32.mrb[5].mxu0  ;;  %v668_v53 = vld [vmem:[#allocation9 + $0x70] sm:$0xff]  ;;  %v669_v54 = vld [vmem:[#allocation9 + $0x78] sm:$0xff] }
 0x2f4   :  { %v749_v56 = vld [vmem:[%s1777_s15] sm:$0xff] }
 0x2f5   :  { %v381_v57 = vmax.f32 %v378_v55, 0.0 }
 0x2f7   :  { %998 = vmatmul.mubr.msk.f32.vlgmr.msra.gmra.mrb[0].mxu1 %vm397_vm2, %v381_v57  ;;  %v750_v57 = vld [vmem:[%s1777_s15 + $0x8] sm:$0xff] }
 0x2f8   :  { %1051 = vmatprep.mubr.msk.f32.mxu1 %vm1372_vm0, %v1373_v1  ;;  %1168 = vmatpush3.bf16.msra.mxu1 %v1167_v2  ;;  %v1215_v59 = vpack.c.bf16 %v750_v57, %v749_v56  ;;  %v755_v2 = vld [vmem:[%s1777_s15 + $0x30] sm:$0xff] }
 0x2f9   :  { %1169 = vmatprep.subr.bf16.mxu1 %v1371_v0 }
 0x2fc   :  { %1171 = vmatpush3.bf16.msra.mxu1 %v1170_v4  ;;  %v1224_v4 = vpack.c.bf16 %v756_v3, %v755_v2 }
 0x2fd   :  { %1172 = vmatprep.subr.bf16.mxu1 %v1371_v0 }
 0x300   :  { %1174 = vmatpush3.bf16.msra.mxu1 %v1173_v7  ;;  %v1227_v7 = vpack.c.bf16 %v758_v6, %v757_v5 }
 0x301   :  { %1175 = vmatprep.subr.bf16.mxu1 %v1371_v0 }
 0x304   :  { %1177 = vmatpush3.bf16.msra.mxu1 %v1176_v10  ;;  %v1230_v10 = vpack.c.bf16 %v760_v9, %v759_v8 }
 0x305   :  { %1178 = vmatprep.subr.bf16.mxu1 %v1371_v0 }
 0x308   :  { %1180 = vmatpush3.bf16.msra.mxu1 %v1179_v13 }
 0x309   :  { %1181 = vmatprep.subr.bf16.mxu1 %v1371_v0 }
 0x30c   :  { %1183 = vmatpush3.bf16.msra.mxu1 %v1182_v16  ;;  %v761_v16 = vld [vmem:[%s1777_s15 + $0x60] sm:$0xff] }
 0x30d   :  { %1184 = vmatprep.subr.bf16.mxu1 %v1371_v0  ;;  %v1233_v18 = vpack.c.bf16 %v762_v17, %v761_v16 }
 0x310   :  { %1186 = vmatpush3.bf16.msra.mxu1 %v1185_v19  ;;  %v763_v19 = vld [vmem:[%s1777_s15 + $0x70] sm:$0xff] }
 0x311   :  { %1187 = vmatprep.subr.bf16.mxu1 %v1371_v0 }
 0x314   :  { %1189 = vmatpush3.bf16.msra.mxu1 %v1188_v27 }
 0x315   :  { %1214 = vmatprep.subr.bf16.mxu1 %v1371_v0 }
 0x3ca   :  { %v467_v21 = vpop.f32.mrb[0].mxu1 }
 0x3cb   :  { %v468_v22 = vadd.f32 %v857_v20, %v467_v21  ;;  %v999_v23 = vpop.f32.mrb[1].mxu1  ;;  %v764_v20 = vld [vmem:[%s1777_s15 + $0x78] sm:$0xff] }
 0x3cc   :  { %v1236_v21 = vpack.c.bf16 %v764_v20, %v763_v19 }
 0x3cd   :  { %v471_v24 = vadd.f32 %v468_v22, %v378_v55  ;;  %v1212_v55 = vpack.c.bf16 %v669_v54, %v668_v53  ;;  %v862_v22 = vld [vmem:[%s1776_s14] ss:$0 sm:$0xff] }
 0x3cf   :  { %1017 = vmatmul.mubr.msk.f32.vlgmr.msra.gmra.mrb[6].mxu0 %vm397_vm2, %v471_v24 }
 0x3d0   :  { %1086 = vmatprep.mubr.msk.f32.mxu0 %vm1372_vm0, %v1373_v1  ;;  %1192 = vmatpush3.bf16.msra.mxu0 %v1191_v31 }
 0x3d1   :  { %1193 = vmatprep.subr.bf16.mxu0 %v1371_v0 }
 0x3d4   :  { %1195 = vmatpush3.bf16.msra.mxu0 %v1194_v33 }
 0x3d5   :  { %1196 = vmatprep.subr.bf16.mxu0 %v1371_v0 }
 0x3d8   :  { %1198 = vmatpush3.bf16.msra.mxu0 %v1197_v36 }
 0x3d9   :  { %1199 = vmatprep.subr.bf16.mxu0 %v1371_v0 }
 0x3dc   :  { %1201 = vmatpush3.bf16.msra.mxu0 %v1200_v39 }
 0x3dd   :  { %1202 = vmatprep.subr.bf16.mxu0 %v1371_v0 }
 0x3e0   :  { %1204 = vmatpush3.bf16.msra.mxu0 %v1203_v42 }
 0x3e1   :  { %1205 = vmatprep.subr.bf16.mxu0 %v1371_v0 }
 0x3e4   :  { %1207 = vmatpush3.bf16.msra.mxu0 %v1206_v45 }
 0x3e5   :  { %1208 = vmatprep.subr.bf16.mxu0 %v1371_v0 }
 0x3e8   :  { %1210 = vmatpush3.bf16.msra.mxu0 %v1209_v48 }
 0x3e9   :  { %1211 = vmatprep.subr.bf16.mxu0 %v1371_v0 }
 0x3ec   :  { %1213 = vmatpush3.bf16.msra.mxu0 %v1212_v55 }
 0x4a2   :  { %v556_v50 = vpop.f32.mrb[6].mxu0 }
 0x4a3   :  { %v557_v51 = vadd.f32 %v859_v49, %v556_v50  ;;  %v1018_v52 = vpop.f32.mrb[7].mxu0 }
 0x4a5   :  { %1052 = vmatmul.mubr.f32.vlgmr.msra.gmra.mrb[2].mxu1 %v557_v51 }
 0x4a6   :  { %1121 = vmatprep.mubr.msk.f32.mxu1 %vm1372_vm0, %v1373_v1  ;;  %v752_v1 = vld [vmem:[%s1777_s15 + $0x18] sm:$0xff]  ;;  %1216 = vmatpush3.bf16.msra.mxu1 %v1215_v59 }
 0x4a7   :  { %v1218_v60 = vpack.c.bf16 %v752_v1, %v751_v58  ;;  %1217 = vmatprep.subr.bf16.mxu1 %v1371_v0 }
 0x4aa   :  { %1219 = vmatpush3.bf16.msra.mxu1 %v1218_v60 }
 0x4ab   :  { %1220 = vmatprep.subr.bf16.mxu1 %v1371_v0 }
 0x4ae   :  { %1222 = vmatpush3.bf16.msra.mxu1 %v1221_v63 }
 0x4af   :  { %1223 = vmatprep.subr.bf16.mxu1 %v1371_v0 }
 0x4b2   :  { %1225 = vmatpush3.bf16.msra.mxu1 %v1224_v4 }
 0x4b3   :  { %1226 = vmatprep.subr.bf16.mxu1 %v1371_v0 }
 0x4b6   :  { %1228 = vmatpush3.bf16.msra.mxu1 %v1227_v7 }
 0x4b7   :  { %1229 = vmatprep.subr.bf16.mxu1 %v1371_v0 }
 0x4ba   :  { %1231 = vmatpush3.bf16.msra.mxu1 %v1230_v10 }
 0x4bb   :  { %1232 = vmatprep.subr.bf16.mxu1 %v1371_v0 }
 0x4be   :  { %1234 = vmatpush3.bf16.msra.mxu1 %v1233_v18 }
 0x4bf   :  { %1235 = vmatprep.subr.bf16.mxu1 %v1371_v0  ;;  %v863_v0 = vld [vmem:[%s1778_s16] ss:$0 sm:$0xff] }
 0x4c2   :  { %1237 = vmatpush3.bf16.msra.mxu1 %v1236_v21 }
 0x578   :  { %v649_v12 = vpop.f32.mrb[2].mxu1 }
 0x579   :  { %v650_v13 = vadd.f32 %v861_v11, %v649_v12  ;;  %v1053_v14 = vpop.f32.mrb[3].mxu1 }
 0x57b   :  { %v653_v15 = vmax.f32 %v650_v13, 0.0 }
 0x57d   :  { %1087 = vmatmul.mubr.f32.vlgmr.msra.gmra.mrb[8].mxu0 %v653_v15 }
 0x650   :  { %v743_v23 = vpop.f32.mrb[8].mxu0 }
 0x651   :  { %v744_v24 = vadd.f32 %v862_v22, %v743_v23  ;;  %v1088_v25 = vpop.f32.mrb[9].mxu0 }
 0x653   :  { %v747_v26 = vadd.f32 %v744_v24, %v650_v13 }
 0x655   :  { %v748_v27 = vadd.f32 %v747_v26, %v557_v51 }
 0x657   :  { %1122 = vmatmul.mubr.f32.vlgmr.msra.gmra.mrb[4].mxu1 %v748_v27 }
 0x72a   :  { %v838_v28 = vpop.f32.mrb[4].mxu1 }
 0x72b   :  { %v839_v29 = vadd.f32 %v863_v0, %v838_v28  ;;  %v1123_v30 = vpop.f32.mrb[5].mxu1 }
 0x72d   :  { %843 = vst.msk [vmem:[%s1786_s13] sm:$0xff] %vm842_vm3, %v839_v29 }
 0x72e   :  { %848 = vsyncpa [#allocation3], 1 }
 0x72f   :  { %849 = vsyncpa [#allocation5], 1 }
 0x730   :  { %850 = vsyncpa [#allocation8], 1 }

</bundles_post_ra>
